<compile_context>
chip_gen: v5e
topology: v5e:2x2
jax: 0.10.0
libtpu: 0.0.40
codegen_flags: <defaults>
</compile_context>

<pallas_src>
import functools

import jax
import jax.numpy as jnp
from jax.experimental import pallas as pl
from jax.experimental.pallas import tpu as pltpu


LANE = 128                    # TPU lane width: class axis padded to this
SUBLANE = 8                   # f32 sublane height: batch rows padded to this
SINGLE_BLOCK_MAX_ROWS = 256   # <= this many rows -> no grid, single VMEM block
BATCH_TILE = 1024             # max rows per grid step for large batches
NEG_BIG = -1e30               # "minus infinity" bias for padded class lanes (f32-safe)


def _round_up(x, m):
    return (x + m - 1) // m * m


def classifier_kernel(x_ref, w_ref, b_ref, out_ref):
    """Fused (Linear o Linear) + softmax over the (lane-dense) class axis.

    x_ref  : (TB, in_dim)    f32/bf16
    w_ref  : (in_dim, n_pad) f32/bf16  -- fused weight w1 @ w2, zero-padded classes
    b_ref  : (1, n_pad)      f32       -- fused bias b1 @ w2 + b2, padded with -1e30
    out_ref: (TB, n_pad)     f32       -- softmax probabilities (padded lanes -> 0)
    """
    logits = jnp.dot(x_ref[...], w_ref[...], preferred_element_type=jnp.float32)
    logits = logits + b_ref[...]                      # broadcast over batch rows

    # Numerically stable softmax; padded classes have bias -1e30 -> exp == 0.
    m = jnp.max(logits, axis=-1, keepdims=True)
    e = jnp.exp(logits - m)
    s = jnp.sum(e, axis=-1, keepdims=True)
    # Exact reciprocal (plain divide): rows sum to 1 to f32 rounding.
    out_ref[...] = (e / s).astype(out_ref.dtype)


def fuse_classifier_params(w1, b1, w2, b2, matmul_dtype=jnp.float32):
    """One-time algebraic fusion + lane-dense padding of the classifier weights.

    Returns (w_p, b_p, n_cls). Call ONCE and reuse across forward calls so the
    per-call wrapper does no weight math.
    """
    in_dim = w1.shape[0]
    n_cls = w2.shape[1]
    n_pad = _round_up(max(n_cls, LANE), LANE)

    w1f = w1.astype(jnp.float32)
    w2f = w2.astype(jnp.float32)
    w_fused = jnp.dot(w1f, w2f)                                   # (in_dim, n_cls)
    b_fused = jnp.dot(b1.astype(jnp.float32), w2f) + b2.astype(jnp.float32)

    w_p = (jnp.zeros((in_dim, n_pad), jnp.float32)
           .at[:, :n_cls].set(w_fused).astype(matmul_dtype))
    b_p = jnp.full((1, n_pad), NEG_BIG, jnp.float32).at[:, :n_cls].set(b_fused)
    w_p, b_p = jax.block_until_ready((w_p, b_p))
    return w_p, b_p, n_cls


@functools.partial(jax.jit, static_argnums=(3,))
def classifier_forward(x, w_p, b_p, n_cls):
    """softmax((x @ w1 + b1) @ w2 + b2, axis=1) with pre-fused padded params."""
    B, in_dim = x.shape
    n_pad = w_p.shape[1]

    x = x.astype(w_p.dtype)
    # Pad rows only to the sublane multiple (8), never to the batch tile.
    rows = _round_up(max(B, SUBLANE), SUBLANE)
    if rows != B:
        x = jnp.pad(x, ((0, rows - B), (0, 0)))

    if rows <= SINGLE_BLOCK_MAX_ROWS:
        # Tiny batch: no grid, no software pipeline -- one VMEM-resident block.
        out_p = pl.pallas_call(
            classifier_kernel,
            out_shape=jax.ShapeDtypeStruct((rows, n_pad), jnp.float32),
            in_specs=[
                pl.BlockSpec(memory_space=pltpu.MemorySpace.VMEM),
                pl.BlockSpec(memory_space=pltpu.MemorySpace.VMEM),
                pl.BlockSpec(memory_space=pltpu.MemorySpace.VMEM),
            ],
            out_specs=pl.BlockSpec(memory_space=pltpu.MemorySpace.VMEM),
        )(x, w_p, b_p)
    else:
        # Tile the batch axis. Pick the tile so the grid always has >= 2 steps
        # (both v7x TensorCores + overlapped in/out DMAs), capped at BATCH_TILE.
        tb = min(BATCH_TILE, _round_up(pl.cdiv(rows, 2), SUBLANE))
        grid = pl.cdiv(rows, tb)          # ragged last block: OOB writes masked

        # Explicit VMEM budget: x/out double-buffered, weight block counted
        # double-buffered and per-TC despite the constant (0,0) index_map.
        itemsize = jnp.dtype(w_p.dtype).itemsize
        footprint = (2 * tb * in_dim * itemsize        # x tiles
                     + 2 * tb * n_pad * 4              # out tiles (f32)
                     + 2 * in_dim * n_pad * itemsize   # fused weight
                     + 2 * n_pad * 4)                  # bias
        vmem_limit = int(min(max(2 * footprint, 16 * 1024 * 1024),
                             64 * 1024 * 1024))
        # TODO(synk): add a K-tiling grid axis over in_dim if the fused weight
        # alone ever approaches the v7x 64 MiB VMEM budget (in_dim ~ 64K+).

        out_p = pl.pallas_call(
            classifier_kernel,
            out_shape=jax.ShapeDtypeStruct((rows, n_pad), jnp.float32),
            grid=(grid,),
            in_specs=[
                pl.BlockSpec((tb, in_dim), lambda i: (i, 0)),
                pl.BlockSpec((in_dim, n_pad), lambda i: (0, 0)),   # VMEM-resident
                pl.BlockSpec((1, n_pad), lambda i: (0, 0)),        # VMEM-resident
            ],
            out_specs=pl.BlockSpec((tb, n_pad), lambda i: (i, 0)),
            compiler_params=pltpu.CompilerParams(
                dimension_semantics=("parallel",),
                vmem_limit_bytes=vmem_limit,
            ),
        )(x, w_p, b_p)

    # Under jit this slice fuses with the consumer instead of a standalone copy.
    return out_p[:B, :n_cls]


def init_params(key, in_dim=64, n_cls=4):
    """Deterministic init mimicking nn.Linear's uniform(-1/sqrt(fan_in), 1/sqrt(fan_in))."""
    hidden = in_dim // 2
    k1, k2, k3, k4 = jax.random.split(key, 4)

    bound1 = 1.0 / jnp.sqrt(in_dim)
    w1 = jax.random.uniform(k1, (in_dim, hidden), jnp.float32, -bound1, bound1)
    b1 = jax.random.uniform(k2, (1, hidden), jnp.float32, -bound1, bound1)

    bound2 = 1.0 / jnp.sqrt(hidden)
    w2 = jax.random.uniform(k3, (hidden, n_cls), jnp.float32, -bound2, bound2)
    b2 = jax.random.uniform(k4, (1, n_cls), jnp.float32, -bound2, bound2)
    return w1, b1, w2, b2


def _reference(x, w1, b1, w2, b2):
    h = x @ w1 + b1
    logits = h @ w2 + b2
    return jax.nn.softmax(logits, axis=1)


if __name__ == "__main__":
    in_dim = 64
    n_cls = 4
    batch = 8

    key = jax.random.PRNGKey(0)
    kx, kp, kx2 = jax.random.split(key, 3)
    x = jax.random.normal(kx, (batch, in_dim), jnp.float32)
    w1, b1, w2, b2 = init_params(kp, in_dim=in_dim, n_cls=n_cls)

    # One-time weight fusion / padding (hoisted out of the forward path).
    w_p, b_p, _ = fuse_classifier_params(w1, b1, w2, b2)

    # Small batch -> no-grid single-block path.
    out = jax.block_until_ready(classifier_forward(x, w_p, b_p, n_cls))
    ref = _reference(x, w1, b1, w2, b2)

    assert out.shape == (batch, n_cls)
    assert jnp.allclose(out, ref, atol=1e-4, rtol=1e-4)
    assert jnp.allclose(jnp.sum(out, axis=1), jnp.ones((batch,)), atol=1e-4)

    # Larger batch -> exercises the batch-tiled, multi-step "parallel" grid path
    # (rows padded only to a multiple of 8, ragged tiling via pl.cdiv).
    x_big = jax.random.normal(kx2, (300, in_dim), jnp.float32)
    out_big = jax.block_until_ready(classifier_forward(x_big, w_p, b_p, n_cls))
    ref_big = _reference(x_big, w1, b1, w2, b2)
    assert out_big.shape == (300, n_cls)
    assert jnp.allclose(out_big, ref_big, atol=1e-4, rtol=1e-4)
    assert jnp.allclose(jnp.sum(out_big, axis=1), jnp.ones((300,)), atol=1e-4)

    print("KERNEL_OK")
</pallas_src>

<mosaic_0001>
module attributes {stable_mosaic.version = 11 : i64} {
  func.func @classifier_kernel(%arg0: memref<8x64xf32, #tpu.memory_space<vmem>>, %arg1: memref<64x128xf32, #tpu.memory_space<vmem>>, %arg2: memref<1x128xf32, #tpu.memory_space<vmem>>, %arg3: memref<8x128xf32, #tpu.memory_space<vmem>>) attributes {dimension_semantics = [], scalar_prefetch = 0 : i64, scratch_operands = 0 : i64, tpu.core_type = #tpu.core_type<tc>} {
    %c0 = arith.constant 0 : index
    %c0_0 = arith.constant 0 : index
    %0 = vector.load %arg0[%c0, %c0_0] : memref<8x64xf32, #tpu.memory_space<vmem>>, vector<8x64xf32>
    %c0_1 = arith.constant 0 : index
    %c0_2 = arith.constant 0 : index
    %1 = vector.load %arg1[%c0_1, %c0_2] : memref<64x128xf32, #tpu.memory_space<vmem>>, vector<64x128xf32>
    %cst = arith.constant dense<0.000000e+00> : vector<8x128xf32>
    %2 = tpu.matmul %0, %1, %cst {dimension_numbers = #tpu.dot_dimension_numbers<[1], [0], [0], [1], [0, 0, 1, 1], [], []>} : vector<8x64xf32>, vector<64x128xf32>, vector<8x128xf32> -> vector<8x128xf32>
    %c0_3 = arith.constant 0 : index
    %c0_4 = arith.constant 0 : index
    %3 = vector.load %arg2[%c0_3, %c0_4] : memref<1x128xf32, #tpu.memory_space<vmem>>, vector<1x128xf32>
    %4 = vector.broadcast %3 : vector<1x128xf32> to vector<8x128xf32>
    %5 = arith.addf %2, %4 : vector<8x128xf32>
    %cst_5 = arith.constant dense<0xFF800000> : vector<8xf32>
    %6 = vector.multi_reduction <maximumf>, %5, %cst_5 [1] : vector<8x128xf32> to vector<8xf32>
    %7 = vector.shape_cast %6 : vector<8xf32> to vector<8x1xf32>
    %8 = vector.broadcast %7 : vector<8x1xf32> to vector<8x128xf32>
    %9 = arith.subf %5, %8 : vector<8x128xf32>
    %10 = math.exp %9 : vector<8x128xf32>
    %cst_6 = arith.constant dense<0.000000e+00> : vector<8xf32>
    %11 = vector.multi_reduction <add>, %10, %cst_6 [1] : vector<8x128xf32> to vector<8xf32>
    %12 = vector.shape_cast %11 : vector<8xf32> to vector<8x1xf32>
    %13 = vector.broadcast %12 : vector<8x1xf32> to vector<8x128xf32>
    %14 = arith.divf %10, %13 : vector<8x128xf32>
    %c0_7 = arith.constant 0 : index
    %c0_8 = arith.constant 0 : index
    %15 = vector.load %arg3[%c0_7, %c0_8] : memref<8x128xf32, #tpu.memory_space<vmem>>, vector<8x128xf32>
    tpu.vector_store %arg3[%c0_7, %c0_8], %14 {strides = array<i32>} : memref<8x128xf32, #tpu.memory_space<vmem>>, vector<8x128xf32>,
    return
  }
}

</mosaic_0001>

<bundles_post_ra>
// kernel: classifier_forward.1
= control target key start
LH: loop header
LB: loop body
LE: loop exit
PB: predicated region body
PF: predicated region fallthrough
CT: control target
= control target key end

     0   :  { %8 = vsyncpa [#allocation3], 0  ;;  %s208_s0 = inlined_call_operand.hbm [shape: f32[8,64], index: 0, kind: input, shape index: {}]   ;;  %s209_s1 = inlined_call_operand.hbm [shape: f32[64,128], index: 1, kind: input, shape index: {}]   ;;  %s210_s2 = inlined_call_operand.vmem [shape: f32[1,128], index: 2, kind: input, shape index: {}]   ;;  %s211_s3 = inlined_call_operand.vmem [shape: f32[8,128], index: 3, kind: output, shape index: {}]  }
   0x1   :  { %s15_s14 = sshll.u32 %s208_s0, 4  ;;  %s16_s14 = int_to_ptr.hbm [resolvable:$true] %s15_s14 }
   0x2   :  { %9 = vsyncpa [#allocation5], 0  ;;  %s172_s15 = smov [#allocation2]   ;;  %s25_s19 = sshll.u32 %s209_s1, 4  ;;  %s26_s19 = int_to_ptr.hbm [resolvable:$true] %s25_s19 }
   0x3   :  { %s17_s16 = sshll.u32 %s172_s15, 4  ;;  %s173_s20 = smov [#allocation4]   ;;  %s18_s16 = int_to_ptr.vmem [resolvable:$true] %s17_s16 }
   0x4   :  { %20 = dma.hbm_to_vmem [thread:$0]  %s16_s14, 128, %s18_s16, [#allocation3]  }
   0x5   :  { %s27_s21 = sshll.u32 %s173_s20, 4  ;;  %s174_s22 = smov 128   ;;  %s28_s21 = int_to_ptr.vmem [resolvable:$true] %s27_s21 }
   0x6   :  { %s175_s23 = smov 8  }
   0x7   :  { %33 = dma.hbm_to_vmem [thread:$0]  %s26_s19, 1024, %s28_s21, [#allocation5], %s174_s22, %s174_s22, %s175_s23  }
   0x8   :  { %168 = dma.done.wait [#allocation3], 128  }
   0x9   :  { %169 = vsyncadd [#allocation3], 4294967168 }
   0xa   :  { %170 = dma.done.wait [#allocation5], 1024  }
   0xb   :  { %171 = vsyncadd [#allocation5], 4294966272  ;;  %v52_v0 = vld [vmem:[#allocation4 + $0x38] sm:$0xff]  ;;  %v51_v1 = vld [vmem:[#allocation4 + $0x30] sm:$0xff]  ;;  %vm57_vm0 = vcmask 523264  }
   0xc   :  { %69 = vmatpush.msra.mxu0 %v52_v0  ;;  %v50_v2 = vld [vmem:[#allocation4 + $0x28] sm:$0xff]  ;;  %v49_v3 = vld [vmem:[#allocation4 + $0x20] sm:$0xff]  ;;  %v48_v4 = vld [vmem:[#allocation4 + $0x18] sm:$0xff] }
   0xd   :  { %v47_v5 = vld [vmem:[#allocation4 + $0x10] sm:$0xff]  ;;  %v46_v6 = vld [vmem:[#allocation4 + $0x8] sm:$0xff]  ;;  %v45_v7 = vld [vmem:[#allocation4] sm:$0xff] }
   0xe   :  { %70 = vmatpush.msra.mxu0 %v51_v1  ;;  %v44_v8 = vld [vmem:[#allocation2] sm:$0xff] }
   0xf   :  { %v115_v9 = vld [vmem:[%s210_s2] ss:$0 sm:$0xff] }
  0x10   :  { %71 = vmatpush.msra.mxu0 %v50_v2 }
  0x12   :  { %72 = vmatpush.msra.mxu0 %v49_v3 }
  0x14   :  { %73 = vmatpush.msra.mxu0 %v48_v4 }
  0x16   :  { %74 = vmatpush.msra.mxu0 %v47_v5 }
  0x18   :  { %75 = vmatpush.msra.mxu0 %v46_v6 }
  0x1a   :  { %76 = vmatpush.msra.mxu0 %v45_v7 }
  0x1b   :  { %110 = vmatmul.msk.f32.vlgmr.msra.gmra.mxu0 %vm57_vm0, %v44_v8 }
  0x98   :  { %v78_v10 = vpop.f32.mrf.mxu0 }
  0x99   :  { %v79_v11 = vadd.f32 %v115_v9, %v78_v10 }
  0x9b   :  { %81 = vmax.xlane.f32.xlu0 %v79_v11 }
 0x10e   :  { %v82_v12 = vpop.xlane.xlu0 %81 }
 0x10f   :  { %v83_v13 = vsub.f32 %v79_v11, %v82_v12 }
 0x111   :  { %v84_v14 = vmul.f32 1.442695, %v83_v13 }
 0x113   :  { %116 = vpow2.f32 %v84_v14 }
 0x119   :  { %v117_v15 = vpop.eup %116 }
 0x11a   :  { %86 = vadd.xlane.f32.xlu0 %v117_v15 }
 0x18d   :  { %v87_v16 = vpop.xlane.xlu0 %86 }
 0x18e   :  { %118 = vrcp.f32 %v87_v16  ;;  %v99_v20 = vand.u32 2147483648, %v87_v16  ;;  %v97_v22 = vand.u32 2147483647, %v87_v16  ;;  %vm93_vm2 = vweird.f32 %v87_v16 }
 0x190   :  { %v100_v24 = vor.u32 1.1754944e-38, %v99_v20  ;;  %vm98_vm4 = vcmp.eq.f32.partialorder %v97_v22, 8.507059e+37 }
 0x194   :  { %v119_v17 = vpop.eup %118 }
 0x195   :  { %v89_v18 = vmul.f32 %v119_v17, %v87_v16  ;;  %vm94_vm1 = vweird.f32 %v119_v17 }
 0x196   :  { %vm95_vm3 = vmor %vm93_vm2, %vm94_vm1 }
 0x197   :  { %v90_v19 = vsub.f32 1.0, %v89_v18 }
 0x199   :  { %v91_v21 = vmul.f32 %v119_v17, %v90_v19 }
 0x19b   :  { %v92_v23 = vadd.f32 %v119_v17, %v91_v21 }
 0x19d   :  { %v96_v25 = vsel %vm95_vm3, %v119_v17, %v92_v23 }
 0x19e   :  { %v101_v26 = vsel %vm98_vm4, %v100_v24, %v96_v25 }
 0x19f   :  { %v102_v27 = vmul.f32 %v117_v15, %v101_v26 }
 0x1a1   :  { %103 = vst [vmem:[%s211_s3] sm:$0xff] %v102_v27 }
 0x1a2   :  { %108 = vsyncpa [#allocation3], 1 }
 0x1a3   :  { %109 = vsyncpa [#allocation5], 1 }

</bundles_post_ra>
